<compile_context>
chip_gen: v6e
topology: v6e:2x2x1
jax: 0.10.0
libtpu: 0.0.40
codegen_flags: <defaults>
</compile_context>

<pallas_src>
import jax
import jax.numpy as jnp
from jax import lax
from jax.experimental import pallas as pl
from jax.experimental.pallas import tpu as pltpu


def _round_up(v, m):
    return (v + m - 1) // m * m


# ---------------------------------------------------------------------------
# Kernel 1: node -> hyperedge aggregation
#   e = relu(de_inv * ((H^T @ x) @ W1))
# grid = (M_p // tile_m, N_p // tile_k); axis 0 parallel over edge tiles,
# axis 1 is the K-reduction over node tiles.
# ---------------------------------------------------------------------------
def _n2e_kernel(h_ref, x_ref, w1_ref, de_inv_ref, e_ref, acc_ref):
    k = pl.program_id(1)

    @pl.when(k == 0)
    def _():
        acc_ref[...] = jnp.zeros_like(acc_ref)

    # H tile arrives as [tile_k (node), tile_m (edge)]; contract over the node
    # axis directly (no explicit transpose through the XLU / extra VMEM copy).
    acc_ref[...] += lax.dot_general(
        h_ref[...],                        # bf16 [tile_k, tile_m]
        x_ref[...].astype(jnp.bfloat16),   # bf16 [tile_k, F_in]
        (((0,), (0,)), ((), ())),
        preferred_element_type=jnp.float32,
    )                                      # f32 [tile_m, F_in]

    @pl.when(k == pl.num_programs(1) - 1)
    def _():
        agg = jnp.dot(acc_ref[...], w1_ref[...],
                      preferred_element_type=jnp.float32)    # [tile_m, F_e]
        e_ref[...] = jnp.maximum(agg * de_inv_ref[...], 0.0)  # norm + ReLU
        # TODO(synk): F.dropout(e, p) is identity in eval mode; training-time
        # dropout (stateful PRNG masking) is not implemented here.


# ---------------------------------------------------------------------------
# Kernel 2: hyperedge -> node aggregation + PReLU
#   n = prelu(dn_inv * ((H @ e) @ W2))
# grid = (N_p // tile_n, M_p // tile_k); axis 0 parallel over node tiles,
# axis 1 is the K-reduction over edge tiles.
# ---------------------------------------------------------------------------
def _e2n_kernel(h_ref, e_ref, w2_ref, dn_inv_ref, a_ref, n_ref, acc_ref):
    k = pl.program_id(1)

    @pl.when(k == 0)
    def _():
        acc_ref[...] = jnp.zeros_like(acc_ref)

    acc_ref[...] += jnp.dot(
        h_ref[...],                        # bf16 [tile_n, tile_k]
        e_ref[...].astype(jnp.bfloat16),   # bf16 [tile_k, F_e]
        preferred_element_type=jnp.float32,
    )                                      # f32 [tile_n, F_e]

    @pl.when(k == pl.num_programs(1) - 1)
    def _():
        x2 = jnp.dot(acc_ref[...], w2_ref[...],
                     preferred_element_type=jnp.float32)     # [tile_n, F_n]
        n = x2 * dn_inv_ref[...]
        a = a_ref[0, 0]                                      # PReLU slope (SMEM)
        n_ref[...] = jnp.where(n > 0, n, a * n)


# ---------------------------------------------------------------------------
# pallas_call wrappers
# ---------------------------------------------------------------------------
def _n2e(H, x, w1, de_inv, *, tile_m, tile_k):
    N_p, M_p = H.shape
    F_in = x.shape[1]
    F_e = w1.shape[1]
    grid = (M_p // tile_m, N_p // tile_k)
    return pl.pallas_call(
        _n2e_kernel,
        out_shape=jax.ShapeDtypeStruct((M_p, F_e), jnp.float32),
        grid=grid,
        in_specs=[
            pl.BlockSpec((tile_k, tile_m), lambda j, k: (k, j)),   # H tile
            pl.BlockSpec((tile_k, F_in), lambda j, k: (k, 0)),     # x tile
            pl.BlockSpec((F_in, F_e), lambda j, k: (0, 0)),        # W1 (small)
            pl.BlockSpec((tile_m, 1), lambda j, k: (j, 0)),        # de_inv tile
        ],
        out_specs=pl.BlockSpec((tile_m, F_e), lambda j, k: (j, 0)),
        scratch_shapes=[pltpu.VMEM((tile_m, F_in), jnp.float32)],
        compiler_params=pltpu.CompilerParams(
            dimension_semantics=("parallel", "arbitrary")),
    )(H, x, w1, de_inv)


def _e2n(H, e, w2, dn_inv, prelu_a, *, tile_n, tile_k):
    N_p, M_p = H.shape
    F_e = e.shape[1]
    F_n = w2.shape[1]
    grid = (N_p // tile_n, M_p // tile_k)
    return pl.pallas_call(
        _e2n_kernel,
        out_shape=jax.ShapeDtypeStruct((N_p, F_n), jnp.float32),
        grid=grid,
        in_specs=[
            pl.BlockSpec((tile_n, tile_k), lambda i, k: (i, k)),   # H tile
            pl.BlockSpec((tile_k, F_e), lambda i, k: (k, 0)),      # e tile
            pl.BlockSpec((F_e, F_n), lambda i, k: (0, 0)),         # W2 (small)
            pl.BlockSpec((tile_n, 1), lambda i, k: (i, 0)),        # dn_inv tile
            pl.BlockSpec(memory_space=pltpu.MemorySpace.SMEM),     # PReLU scalar
        ],
        out_specs=pl.BlockSpec((tile_n, F_n), lambda i, k: (i, 0)),
        scratch_shapes=[pltpu.VMEM((tile_n, F_e), jnp.float32)],
        compiler_params=pltpu.CompilerParams(
            dimension_semantics=("parallel", "arbitrary")),
    )(H, e, w2, dn_inv, prelu_a)


# ---------------------------------------------------------------------------
# Forward pass (HGNN.forward semantics, eval mode)
# ---------------------------------------------------------------------------
def hgnn_forward(x, hyperedge_index, num_nodes, num_edges, dropout_rate, params,
                 *, tile_n=256, tile_m=256):
    del dropout_rate  # inference semantics (dropout is identity in eval mode)
    node_idx = hyperedge_index[0]
    edge_idx = hyperedge_index[1]

    lane = 128
    N_p = _round_up(num_nodes, tile_n)
    M_p = _round_up(num_edges, tile_m)

    # ---- glue (nnz-proportional setup, hoisted out of the hot kernels) ------
    # Degrees via scatter_add-of-ones (duplicate incidences are counted, as in
    # the reference scatter_add semantics).
    Dn = jnp.zeros((N_p,), jnp.float32).at[node_idx].add(1.0)
    De = jnp.zeros((M_p,), jnp.float32).at[edge_idx].add(1.0)
    dn_inv = jnp.where(Dn > 0, 1.0 / Dn, 0.0).reshape(N_p, 1)
    de_inv = jnp.where(De > 0, 1.0 / De, 0.0).reshape(M_p, 1)

    # Dense incidence matrix, streamed as bf16 (values are exact small ints).
    H = (jnp.zeros((N_p, M_p), jnp.float32)
         .at[node_idx, edge_idx].add(1.0)).astype(jnp.bfloat16)
    # TODO(synk): for very large sparse hypergraphs, replace the dense-H path
    # with a CSR gather kernel driven by PrefetchScalarGridSpec (pattern P2).

    a = params["prelu_a"]          # (1, 1) f32 -> SMEM inside the e2n kernel

    # Zero-pad node features: rows to N_p, feature columns to a lane multiple.
    in_dim = x.shape[1]
    F_in_p = _round_up(in_dim, lane)
    cur = jnp.zeros((N_p, F_in_p), jnp.float32).at[:num_nodes, :in_dim].set(
        x.astype(jnp.float32))

    e_pad = None
    last_edge_dim = params["layers"][-1][0].shape[1]
    last_node_dim = params["layers"][-1][1].shape[1]
    for (w1, w2) in params["layers"]:
        d_in, d_e = w1.shape
        d_n = w2.shape[1]
        F_prev_p = cur.shape[1]
        F_e_p = _round_up(d_e, lane)
        F_n_p = _round_up(d_n, lane)
        w1_p = jnp.zeros((F_prev_p, F_e_p), jnp.float32).at[:d_in, :d_e].set(w1)
        w2_p = jnp.zeros((F_e_p, F_n_p), jnp.float32).at[:d_e, :d_n].set(w2)

        e_pad = _n2e(H, cur, w1_p, de_inv, tile_m=tile_m, tile_k=tile_n)
        cur = _e2n(H, e_pad, w2_p, dn_inv, a, tile_n=tile_n, tile_k=tile_m)

    n_out = cur[:num_nodes, :last_node_dim]
    e_out = e_pad[:num_edges, :last_edge_dim]
    return n_out, e_out


def init_params(key, in_dim, edge_dim, node_dim, num_layers):
    """Glorot-ish init matching ProposedConv's two bias-free Linears."""
    def glorot(k, fan_in, fan_out):
        scale = jnp.sqrt(2.0 / (fan_in + fan_out))
        return jax.random.normal(k, (fan_in, fan_out), jnp.float32) * scale

    layers = []
    dims_in = [in_dim] + [node_dim] * (num_layers - 1)
    for i in range(num_layers):
        key, k1, k2 = jax.random.split(key, 3)
        w1 = glorot(k1, dims_in[i], edge_dim)   # lin_n2e
        w2 = glorot(k2, edge_dim, node_dim)     # lin_e2n
        layers.append((w1, w2))
    prelu_a = jnp.full((1, 1), 0.25, jnp.float32)  # nn.PReLU() default, shared
    return {"layers": layers, "prelu_a": prelu_a}


# ---------------------------------------------------------------------------
# Pure-JAX reference (same math, f32, PyTorch op order) for a sanity check.
# ---------------------------------------------------------------------------
def _reference_forward(x, hyperedge_index, num_nodes, num_edges, params):
    node_idx, edge_idx = hyperedge_index
    Dn = jnp.zeros((num_nodes,), jnp.float32).at[node_idx].add(1.0)
    De = jnp.zeros((num_edges,), jnp.float32).at[edge_idx].add(1.0)
    dn_inv = jnp.where(Dn > 0, 1.0 / Dn, 0.0)
    de_inv = jnp.where(De > 0, 1.0 / De, 0.0)
    H = jnp.zeros((num_nodes, num_edges), jnp.float32).at[node_idx, edge_idx].add(1.0)
    a = params["prelu_a"][0, 0]
    e = None
    for (w1, w2) in params["layers"]:
        xp = x @ w1
        e = jnp.maximum(de_inv[:, None] * (H.T @ xp), 0.0)
        x2 = e @ w2
        n = dn_inv[:, None] * (H @ x2)
        x = jnp.where(n > 0, n, a * n)
    return x, e


if __name__ == "__main__":
    key = jax.random.PRNGKey(0)

    # Small shapes consistent with HGNN.forward (node feats + sparse incidence).
    num_nodes, num_edges = 384, 256
    in_dim, edge_dim, node_dim = 8, 16, 16
    num_layers = 2
    nnz = 2048
    dropout_rate = 0.2

    k_x, k_n, k_e, k_p = jax.random.split(key, 4)
    x = jax.random.normal(k_x, (num_nodes, in_dim), jnp.float32)
    node_idx = jax.random.randint(k_n, (nnz,), 0, num_nodes, jnp.int32)
    edge_idx = jax.random.randint(k_e, (nnz,), 0, num_edges, jnp.int32)
    hyperedge_index = jnp.stack([node_idx, edge_idx], axis=0)  # [2, nnz]

    params = init_params(k_p, in_dim, edge_dim, node_dim, num_layers)

    # 128-tiles here so the demo exercises a multi-tile grid with K-reduction;
    # on real graphs use the 256 (v6e/v7x) defaults or larger.
    n_out, e_out = hgnn_forward(x, hyperedge_index, num_nodes, num_edges,
                                dropout_rate, params, tile_n=128, tile_m=128)
    jax.block_until_ready((n_out, e_out))

    assert n_out.shape == (num_nodes, node_dim)
    assert e_out.shape == (num_edges, edge_dim)
    assert jnp.all(jnp.isfinite(n_out)) and jnp.all(jnp.isfinite(e_out))

    n_exp, e_exp = _reference_forward(x, hyperedge_index, num_nodes, num_edges,
                                      params)
    assert jnp.allclose(n_out, n_exp, rtol=5e-2, atol=5e-2), \
        float(jnp.max(jnp.abs(n_out - n_exp)))
    assert jnp.allclose(e_out, e_exp, rtol=5e-2, atol=5e-2), \
        float(jnp.max(jnp.abs(e_out - e_exp)))

    print("KERNEL_OK")
</pallas_src>

<mosaic_0001>
module attributes {stable_mosaic.version = 11 : i64} {
  func.func @_n2e_kernel(%arg0: i32, %arg1: i32, %arg2: memref<128x128xbf16, #tpu.memory_space<vmem>>, %arg3: memref<128x128xf32, #tpu.memory_space<vmem>>, %arg4: memref<128x128xf32, #tpu.memory_space<vmem>>, %arg5: memref<128x1xf32, #tpu.memory_space<vmem>>, %arg6: memref<128x128xf32, #tpu.memory_space<vmem>>, %arg7: memref<128x128xf32, #tpu.memory_space<vmem>>) attributes {dimension_semantics = [#tpu.dimension_semantics<parallel>, #tpu.dimension_semantics<arbitrary>], iteration_bounds = array<i64: 2, 3>, scalar_prefetch = 0 : i64, scratch_operands = 1 : i64, tpu.core_type = #tpu.core_type<tc>, window_params = [{transform_indices = @transform_0, window_bounds = array<i64: 128, 128>}, {transform_indices = @transform_1, window_bounds = array<i64: 128, 128>}, {pipeline_mode = #tpu.pipeline_mode<synchronous>, transform_indices = @transform_2, window_bounds = array<i64: 128, 128>}, {transform_indices = @transform_3, window_bounds = array<i64: 128, 1>}, {transform_indices = @transform_4, window_bounds = array<i64: 128, 128>}]} {
    %c0_i32 = arith.constant 0 : i32
    %0 = arith.cmpi eq, %arg1, %c0_i32 : i32
    %1 = arith.extui %0 : i1 to i32
    %c0_i32_0 = arith.constant 0 : i32
    %2 = arith.cmpi ne, %1, %c0_i32_0 : i32
    scf.if %2 {
      %cst_9 = arith.constant 0.000000e+00 : f32
      %13 = vector.broadcast %cst_9 : f32 to vector<128x128xf32>
      %c0_10 = arith.constant 0 : index
      %c0_11 = arith.constant 0 : index
      %14 = vector.load %arg7[%c0_10, %c0_11] : memref<128x128xf32, #tpu.memory_space<vmem>>, vector<128x128xf32>
      tpu.vector_store %arg7[%c0_10, %c0_11], %13 {strides = array<i32>} : memref<128x128xf32, #tpu.memory_space<vmem>>, vector<128x128xf32>,
    } else {
    }
    %c0 = arith.constant 0 : index
    %c0_1 = arith.constant 0 : index
    %3 = vector.load %arg7[%c0, %c0_1] : memref<128x128xf32, #tpu.memory_space<vmem>>, vector<128x128xf32>
    %c0_2 = arith.constant 0 : index
    %c0_3 = arith.constant 0 : index
    %4 = vector.load %arg2[%c0_2, %c0_3] : memref<128x128xbf16, #tpu.memory_space<vmem>>, vector<128x128xbf16>
    %c0_4 = arith.constant 0 : index
    %c0_5 = arith.constant 0 : index
    %5 = vector.load %arg3[%c0_4, %c0_5] : memref<128x128xf32, #tpu.memory_space<vmem>>, vector<128x128xf32>
    %6 = arith.truncf %5 : vector<128x128xf32> to vector<128x128xbf16>
    %cst = arith.constant dense<0.000000e+00> : vector<128x128xf32>
    %7 = tpu.matmul %4, %6, %cst {dimension_numbers = #tpu.dot_dimension_numbers<[0], [0], [1], [1], [0, 1, 1, 1], [], []>} : vector<128x128xbf16>, vector<128x128xbf16>, vector<128x128xf32> -> vector<128x128xf32>
    %8 = arith.addf %3, %7 : vector<128x128xf32>
    %c0_6 = arith.constant 0 : index
    %c0_7 = arith.constant 0 : index
    %9 = vector.load %arg7[%c0_6, %c0_7] : memref<128x128xf32, #tpu.memory_space<vmem>>, vector<128x128xf32>
    tpu.vector_store %arg7[%c0_6, %c0_7], %8 {strides = array<i32>} : memref<128x128xf32, #tpu.memory_space<vmem>>, vector<128x128xf32>,
    %c2_i32 = arith.constant 2 : i32
    %10 = arith.cmpi eq, %arg1, %c2_i32 : i32
    %11 = arith.extui %10 : i1 to i32
    %c0_i32_8 = arith.constant 0 : i32
    %12 = arith.cmpi ne, %11, %c0_i32_8 : i32
    scf.if %12 {
      %c0_9 = arith.constant 0 : index
      %c0_10 = arith.constant 0 : index
      %13 = vector.load %arg7[%c0_9, %c0_10] : memref<128x128xf32, #tpu.memory_space<vmem>>, vector<128x128xf32>
      %c0_11 = arith.constant 0 : index
      %c0_12 = arith.constant 0 : index
      %14 = vector.load %arg4[%c0_11, %c0_12] : memref<128x128xf32, #tpu.memory_space<vmem>>, vector<128x128xf32>
      %cst_13 = arith.constant dense<0.000000e+00> : vector<128x128xf32>
      %15 = tpu.matmul %13, %14, %cst_13 {dimension_numbers = #tpu.dot_dimension_numbers<[1], [0], [0], [1], [0, 0, 1, 1], [], []>} : vector<128x128xf32>, vector<128x128xf32>, vector<128x128xf32> -> vector<128x128xf32>
      %c0_14 = arith.constant 0 : index
      %c0_15 = arith.constant 0 : index
      %16 = vector.load %arg5[%c0_14, %c0_15] : memref<128x1xf32, #tpu.memory_space<vmem>>, vector<128x1xf32>
      %17 = vector.broadcast %16 : vector<128x1xf32> to vector<128x128xf32>
      %18 = arith.mulf %15, %17 : vector<128x128xf32>
      %cst_16 = arith.constant 0.000000e+00 : f32
      %19 = vector.broadcast %cst_16 : f32 to vector<128x128xf32>
      %20 = arith.maximumf %18, %19 : vector<128x128xf32>
      %c0_17 = arith.constant 0 : index
      %c0_18 = arith.constant 0 : index
      %21 = vector.load %arg6[%c0_17, %c0_18] : memref<128x128xf32, #tpu.memory_space<vmem>>, vector<128x128xf32>
      tpu.vector_store %arg6[%c0_17, %c0_18], %20 {strides = array<i32>} : memref<128x128xf32, #tpu.memory_space<vmem>>, vector<128x128xf32>,
    } else {
    }
    return
  }
  func.func @transform_0(%arg0: i32, %arg1: i32) -> (i32, i32) {
    %c0_i32 = arith.constant 0 : i32
    return %arg1, %arg0 : i32, i32
  }
  func.func @transform_1(%arg0: i32, %arg1: i32) -> (i32, i32) {
    %c0_i32 = arith.constant 0 : i32
    %c0_i32_0 = arith.constant 0 : i32
    return %arg1, %c0_i32 : i32, i32
  }
  func.func @transform_2(%arg0: i32, %arg1: i32) -> (i32, i32) {
    %c0_i32 = arith.constant 0 : i32
    %c0_i32_0 = arith.constant 0 : i32
    %c0_i32_1 = arith.constant 0 : i32
    return %c0_i32, %c0_i32_0 : i32, i32
  }
  func.func @transform_3(%arg0: i32, %arg1: i32) -> (i32, i32) {
    %c0_i32 = arith.constant 0 : i32
    %c0_i32_0 = arith.constant 0 : i32
    return %arg0, %c0_i32 : i32, i32
  }
  func.func @transform_4(%arg0: i32, %arg1: i32) -> (i32, i32) {
    %c0_i32 = arith.constant 0 : i32
    %c0_i32_0 = arith.constant 0 : i32
    return %arg0, %c0_i32 : i32, i32
  }
}

</mosaic_0001>

<bundles_post_ra>
// kernel: tpu_custom_call.1
= control target key start
LH: loop header
LB: loop body
LE: loop exit
PB: predicated region body
PF: predicated region fallthrough
CT: control target
= control target key end

     0   :  { %s2047_s0 = inlined_call_operand.hbm [shape: bf16[384,256], index: 0, kind: input, shape index: {}]   ;;  %s2048_s1 = inlined_call_operand.hbm [shape: f32[384,128], index: 1, kind: input, shape index: {}]   ;;  %s2049_s2 = inlined_call_operand.vmem [shape: f32[128,128], index: 2, kind: input, shape index: {}]   ;;  %s2050_s3 = inlined_call_operand.vmem [shape: f32[256,1], index: 3, kind: input, shape index: {}]   ;;  %s2051_s4 = inlined_call_operand.hbm [shape: f32[256,128], index: 4, kind: output, shape index: {}]  }
   0x1   :  { %2057 = sst [smem:[#allocation17_spill]] %s2047_s0 }
   0x2   :  { %2058 = sst [smem:[#allocation18_spill]] %s2048_s1 }
   0x3   :  { %2059 = sst [smem:[#allocation19_spill]] %s2049_s2 }
   0x4   :  { %2060 = sst [smem:[#allocation20_spill]] %s2050_s3 }
   0x5   :  { %2061 = sst [smem:[#allocation21_spill]] %s2051_s4 }
   0x6   :  { %9 = vsyncpa [#allocation4], 0 }
   0x7   :  { %11 = vsyncpa [#allocation4 + $0x1], 0 }
   0x8   :  { %12 = vsyncpa [#allocation7], 0 }
   0x9   :  { %14 = vsyncpa [#allocation7 + $0x1], 0 }
   0xa   :  { %15 = vsyncpa [#allocation5], 0 }
   0xb   :  { %17 = vsyncpa [#allocation5 + $0x1], 0  ;;  %s1637_s15 = smov 0   ;;  %s1639_s16 = smov 0  }
   0xc   :  { %s1641_s17 = smov 0   ;;  %s1643_s18 = smov 0  }
   0xd   :  { %s1645_s19 = smov 0   ;;  %s1647_s20 = smov 0  }
   0xe   :  { %s1649_s21 = smov 0   ;;  %s1651_s22 = smov 0  }
   0xf   :  { %s1653_s23 = smov 0   ;;  %s1655_s24 = smov 0  }
  0x10   :  { %s1657_s25 = smov 0   ;;  %s1659_s26 = smov 0  }
  0x11   :  { %s1661_s27 = smov 0   ;;  %s1663_s28 = smov 0  }
  0x12 LB: > { %2062 = sst [smem:[#allocation12_spill]] %s1547_s15  ;;  %s32_s29 = sadd.s32 1, %s1591_s26  ;;  %s1599_s28 = sphi %s1663_s28, %s23_s28   ;;  %s1595_s27 = sphi %s1661_s27, %s2104_s27   ;;  %s1591_s26 = sphi %s1659_s26, %s2103_s26   ;;  %s1587_s25 = sphi %s1657_s25, %s2102_s25   ;;  %s1583_s24 = sphi %s1655_s24, %s2101_s24   ;;  %s1579_s23 = sphi %s1653_s23, %s2100_s23   ;;  %s1575_s22 = sphi %s1651_s22, %s2099_s22   ;;  %s1571_s21 = sphi %s1649_s21, %s2098_s21   ;;  %s1567_s20 = sphi %s1647_s20, %s2097_s20   ;;  %s1563_s19 = sphi %s1645_s19, %s2096_s19   ;;  %s1559_s18 = sphi %s1643_s18, %s2095_s18   ;;  %s1555_s17 = sphi %s1641_s17, %s2094_s17   ;;  %s1551_s16 = sphi %s1639_s16, %s2093_s16   ;;  %s1547_s15 = sphi %s1637_s15, %s2092_s15  }
  0x13   : > { %2063 = sst [smem:[#allocation13_spill]] %s1583_s24  ;;  %s35_s30 = sadd.s32 1, %s1595_s27 }
  0x14   : > { %2064 = sst [smem:[#allocation14_spill]] %s1587_s25  ;;  %p33_p0 = scmp.ge.s32.totalorder %s32_s29, 3 }
  0x15   : > { %s44_s5 = sadd.s32 1, %s1579_s23  ;;  %p51_p1 = scmp.ne.s32.totalorder %s1579_s23, %s1575_s22 }
  0x16   : > { %p52_p2 = scmp.eq.s32.totalorder %s1599_s28, 0  ;;  %s2106_s29 = smov (%p33_p0, %s32_s29), 0 }
  0x17   : > { %2065 = sst [smem:[#allocation15_spill]] %s2106_s29  ;;  %s2108_s30 = smov (!%p33_p0, %s35_s30), %s1595_s27 }
  0x18   : > { %s1718_s6 = ssub.s32 %s1591_s26, %s2106_s29  ;;  %p1722_p3 = por %p52_p2, %p51_p1 }
  0x19   : > { %p37_p4 = scmp.ge.s32.totalorder %s2108_s30, 2  ;;  %p57_p5 = scmp.ne.s32.totalorder %s1575_s22, %s1571_s21 }
  0x1a   : > { %s143_s8 = sadd.s32 1, %s1555_s17  ;;  %p1263_p6 = scmp.lt.s32.totalorder %s1599_s28, 6 }
  0x1b   : > { %s2110_s30 = smov (%p37_p4, %s2108_s30), 0  ;;  %s183_s9 = sand.u32 1, %s1579_s23  }
  0x1c   : > { %2067 = sst [smem:[#allocation16_spill]] %s2110_s30  ;;  %s40_s10 = ssub.s32 %s1595_s27, %s2110_s30 }
  0x1d   : > { %s41_s11 = sor.u32 %s40_s10, %s1718_s6  ;;  %p141_p7 = scmp.eq.s32.totalorder %s40_s10, 0 }
  0x1e   : > { %p42_p8 = scmp.eq.s32.totalorder %s41_s11, 0  ;;  %s1031_s12 = sshll.u32 %s183_s9, 6 }
  0x1f   : > { %s1737_s13 = scalar_select %p141_p7, %s1555_s17, %s143_s8  }
  0x20   : > { %s1740_s14 = scalar_select %p42_p8, %s1579_s23, %s44_s5  }
  0x21   : > { %s1059_s29 = sshll.u32 %s1591_s26, 5  ;;  %s187_s2 = scalar_lea.vmem [#allocation3], %s1031_s12 }
  0x22   : > { %s193_s4 = sadd.s32 %s1595_s27, %s1059_s29  ;;  %s196_s24 = sshll.u32 %s187_s2, 4  ;;  %s197_s24 = int_to_ptr.vmem [resolvable:$true] %s196_s24 }
  0x23   : > { %s1034_s3 = sshll.u32 %s193_s4, 6  ;;  %s2068_s0 = sld [smem:[#allocation17_spill]] }
  0x24   : > { %p1751_p9 = pnand %p1263_p6, %p1722_p3  ;;  %s184_s8 = scalar_lea.sflag [#allocation4], %s183_s9 }
  0x25   : > { %s1408_s5 = scalar_lea.vmem %s197_s24, 1024  ;;  %s1601_s2 = smov [#allocation3]  }
  0x26   : > { %p1397_p10 = pneg %p1751_p9  ;;  %p1409_p11 = scmp.ne.s32.totalorder %s197_s24, %s1408_s5 }
  0x27   : > { %s1413_s4 = sshll.u32 %s1601_s2, 4  ;;  %s1414_s4 = int_to_ptr.vmem [resolvable:$false] %s1413_s4 }
  0x28   : > { %p1411_p12 = pnand %p1409_p11, %p1397_p10  ;;  %s1415_s29 = scalar_lea.vmem %s1414_s4, 2048 }
  0x29   : > { %s195_s15 = scalar_lea.hbm %s2068_s0, %s1034_s3  ;;  %p1416_p0 = scmp.lt.s32.totalorder %s197_s24, %s1414_s4 }
  0x2a   : > { %p1412_p13 = pneg %p1411_p12  ;;  %p1417_p1 = scmp.lt.s32.totalorder %s1415_s29, %s1408_s5 }
  0x2c   : > { %p1418_p4 = por %p1417_p1, %p1416_p0 }
  0x2e   : > { %p1419_p7 = pnand %p1418_p4, %p1412_p13 }
  0x30   : > { %1422 = shalt.err (!%p1419_p7)
}
  0x31   : > { %s2055_s1 = smov 128   ;;  %s1603_s3 = smov 64  }
  0x32   : > { %s1604_s25 = smov 4   ;;  %p1038_p3 = scmp.ge.s32.totalorder %s1599_s28, 1 }
  0x33   : > { %1255 = dma.hbm_to_vmem [thread:$0]  (!%p1751_p9), %s195_s15, 1024, %s197_s24, %s184_s8, %s2055_s1, %s1603_s3, %s1604_s25  }
  0x34   : > { %s2070_s7 = sld [smem:[#allocation12_spill]]  ;;  %p234_p8 = scmp.lt.s32.totalorder %s1599_s28, 7 }
  0x35   : > { %s1027_s11 = sadd.s32 4294967295, %s1599_s28   ;;  %s1028_s12 = sadd.s32 4294967294, %s1599_s28  }
  0x36   : > { %p1762_p10 = pnand %p1038_p3, %p234_p8  ;;  %p58_p11 = scmp.eq.s32.totalorder %s1027_s11, 0 }
  0x37   : > { %p68_p12 = scmp.eq.s32.totalorder %s1718_s6, 0  ;;  %s70_s5 = sadd.s32 1, %s1567_s20 }
  0x38   : > { %p1773_p13 = por %p58_p11, %p57_p5  ;;  %p77_p9 = scmp.ne.s32.totalorder %s1567_s20, %s1563_s19 }
  0x39   : > { %s1780_s15 = scalar_select %p68_p12, %s1567_s20, %s70_s5  }
  0x3a   : > { %p1784_p0 = por %p77_p9, %p52_p2  ;;  %p83_p1 = scmp.ne.s32.totalorder %s1563_s19, %s1559_s18 }
  0x3b   : > { %p153_p4 = scmp.ne.s32.totalorder %s1555_s17, %s1551_s16  ;;  %p154_p7 = scmp.eq.s32.totalorder %s1027_s11, 5 }
  0x3c   : > { %p1792_p3 = por %p83_p1, %p58_p11  ;;  %p159_p5 = scmp.ne.s32.totalorder %s1551_s16, %s2070_s7 }
  0x3d   : > { %p1798_p8 = por %p154_p7, %p153_p4  ;;  %p160_p12 = scmp.eq.s32.totalorder %s1028_s12, 5 }
  0x3e   : > { %s206_s8 = sand.u32 1, %s1567_s20   ;;  %s1060_s2 = sshll.u32 %s1591_s26, 11 }
  0x3f   : > { %p1804_p2 = por %p160_p12, %p159_p5  ;;  %s1035_s29 = sshll.u32 %s206_s8, 7 }
  0x40   : > { %s2077_s25 = sld [smem:[#allocation18_spill]]  ;;  %p1815_p11 = pnand %p1263_p6, %p1784_p0 }
  0x41   : > { %s210_s5 = scalar_lea.vmem [#allocation6], %s1035_s29  ;;  %s207_s1 = scalar_lea.sflag [#allocation7], %s206_s8 }
  0x42   : > { %s217_s12 = sshll.u32 %s210_s5, 4  ;;  %p1425_p9 = pneg %p1815_p11  ;;  %s218_s12 = int_to_ptr.vmem [resolvable:$true] %s217_s12 }
  0x43   : > { %s1436_s0 = scalar_lea.vmem %s218_s12, 2048  ;;  %s1605_s30 = smov [#allocation6]  }
  0x44   : > { %p1437_p1 = scmp.ne.s32.totalorder %s218_s12, %s1436_s0  ;;  %s1441_s18 = sshll.u32 %s1605_s30, 4  ;;  %s1442_s18 = int_to_ptr.vmem [resolvable:$false] %s1441_s18 }
  0x45   : > { %s1443_s24 = scalar_lea.vmem %s1442_s18, 4096  ;;  %p1444_p5 = scmp.lt.s32.totalorder %s218_s12, %s1442_s18 }
  0x46   : > { %s216_s11 = scalar_lea.hbm %s2077_s25, %s1060_s2  ;;  %p1439_p4 = pnand %p1437_p1, %p1425_p9 }
  0x47   : > { %p1445_p6 = scmp.lt.s32.totalorder %s1443_s24, %s1436_s0 }
  0x48   : > { %p1440_p7 = pneg %p1439_p4 }
  0x49   : > { %p1446_p0 = por %p1445_p6, %p1444_p5 }
  0x4b   : > { %p1447_p12 = pnand %p1446_p0, %p1440_p7 }
  0x4d   : > { %1450 = shalt.err (!%p1447_p12)
}
  0x4e   : > { %s1606_s2 = smov 8   ;;  %s2079_s29 = smov 128  }
  0x4f   : > { %1258 = dma.hbm_to_vmem [thread:$0]  (!%p1815_p11), %s216_s11, 2048, %s218_s12, %s207_s1, %s2079_s29, %s2079_s29, %s1606_s2  }
  0x50   : > { %238 = sbr.rel (%p1762_p10) target bundleno = 715 (0x2cb), region = 36  ;;  %s240_s8 = sand.u32 (!%p1762_p10), 1, %s1575_s22  }
  0x51   : > { %s1039_s30 = sshll.u32 (!%p1762_p10), %s240_s8, 6  ;;  %s241_s3 = scalar_lea.sflag (!%p1762_p10), [#allocation4], %s240_s8 }
  0x52   : > { %s1828_s25 = scalar_lea.vmem (!%p1762_p10), [#allocation3], %s1039_s30 }
  0x55   : > { %1534 = dma.done.wait (%p1773_p13), %s241_s3, 1024  }
  0x56   : > { %1536 = vsyncadd (%p1773_p13), %s241_s3, 4294966272  ;;  %s249_s0 = sand.u32 1, %s1563_s19  }
  0x57   : > { %s1040_s7 = sshll.u32 %s249_s0, 7  ;;  %s250_s1 = scalar_lea.sflag [#allocation7], %s249_s0 }
  0x58   : > { %s1835_s11 = scalar_lea.vmem [#allocation6], %s1040_s7 }
  0x59   : > { %1538 = dma.done.wait (%p1792_p3), %s250_s1, 2048  }
  0x5a   : > { %1540 = vsyncadd (%p1792_p3), %s250_s1, 4294965248  ;;  %s2080_s9 = sld [smem:[#allocation14_spill]]  ;;  %s285_s5 = sand.u32 1, %s1551_s16  }
  0x5b   : > { %s1041_s10 = sshll.u32 %s285_s5, 7  ;;  %s2081_s29 = sld [smem:[#allocation20_spill]] }
  0x5c   : > { %s1850_s30 = scalar_lea.vmem [#allocation8], %s1041_s10  ;;  %s2082_s3 = sld [smem:[#allocation13_spill]] }
  0x60   : > { %s1042_s12 = sshll.u32 %s2080_s9, 4 }
  0x61   : > { %p291_p10 = scmp.lt.s32.totalorder %s1042_s12, 31 }
  0x62   : > { %p1044_p13 = scmp.ne.s32.totalorder %s2082_s3, 0 }
  0x63   : > { %s2112_s12 = smov (!%p291_p10, %s1042_s12), 31 }
  0x64   : > { %s1043_s18 = sshll.u32 %s2112_s12, 3  ;;  %301 = sbr.rel (%p1044_p13) target bundleno = 114 (0x72), region = 48 }
  0x65   : > { %s1848_s8 = scalar_lea.vmem %s2081_s29, %s1043_s18 }
  0x69   : > { %v1607_v0 = vmov 0.0  }
  0x6a   : > { %302 = vst [vmem:[#allocation2 + $0x30] sm:$0xff] %v1607_v0  ;;  %303 = vst [vmem:[#allocation2] sm:$0xff] %v1607_v0 }
  0x6b   : > { %304 = vst [vmem:[#allocation2 + $0x58] sm:$0xff] %v1607_v0  ;;  %305 = vst [vmem:[#allocation2 + $0x18] sm:$0xff] %v1607_v0 }
  0x6c   : > { %306 = vst [vmem:[#allocation2 + $0x50] sm:$0xff] %v1607_v0  ;;  %307 = vst [vmem:[#allocation2 + $0x68] sm:$0xff] %v1607_v0 }
  0x6d   : > { %308 = vst [vmem:[#allocation2 + $0x8] sm:$0xff] %v1607_v0  ;;  %309 = vst [vmem:[#allocation2 + $0x48] sm:$0xff] %v1607_v0 }
  0x6e   : > { %310 = vst [vmem:[#allocation2 + $0x40] sm:$0xff] %v1607_v0  ;;  %311 = vst [vmem:[#allocation2 + $0x20] sm:$0xff] %v1607_v0 }
  0x6f   : > { %312 = vst [vmem:[#allocation2 + $0x10] sm:$0xff] %v1607_v0  ;;  %313 = vst [vmem:[#allocation2 + $0x38] sm:$0xff] %v1607_v0 }
  0x70   : > { %314 = vst [vmem:[#allocation2 + $0x60] sm:$0xff] %v1607_v0  ;;  %315 = vst [vmem:[#allocation2 + $0x70] sm:$0xff] %v1607_v0 }
  0x71   : > { %316 = vst [vmem:[#allocation2 + $0x78] sm:$0xff] %v1607_v0  ;;  %317 = vst [vmem:[#allocation2 + $0x28] sm:$0xff] %v1607_v0 }
  0x72 PF: > { %v1385_v1 = vld [vmem:[%s1828_s25] sm:$0xff]   ;;  %v1386_v2 = vld [vmem:[%s1828_s25 + $0x8] sm:$0xff]   ;;  %v1387_v3 = vld [vmem:[%s1828_s25 + $0x10] sm:$0xff]   ;;  %s2083_s6 = sld [smem:[#allocation13_spill]] }
  0x73   : > { %422 = vxpose.xlu0.c.b16.start [1/8] %v1385_v1, 128  ;;  %v364_v4 = vld [vmem:[%s1835_s11 + $0x70] sm:$0xff]  ;;  %v365_v5 = vld [vmem:[%s1835_s11 + $0x78] sm:$0xff]  ;;  %v362_v6 = vld [vmem:[%s1835_s11 + $0x60] sm:$0xff] }
  0x74   : > { %v373_v7 = vpack.c.bf16 %v365_v5, %v364_v4  ;;  %v363_v8 = vld [vmem:[%s1835_s11 + $0x68] sm:$0xff]  ;;  %v1388_v9 = vld [vmem:[%s1828_s25 + $0x18] sm:$0xff]   ;;  %v360_v11 = vld [vmem:[%s1835_s11 + $0x50] sm:$0xff] }
  0x75   : > { %v372_v10 = vpack.c.bf16 %v363_v8, %v362_v6  ;;  %v361_v12 = vld [vmem:[%s1835_s11 + $0x58] sm:$0xff]  ;;  %v1389_v14 = vld [vmem:[%s1828_s25 + $0x20] sm:$0xff]   ;;  %v359_v16 = vld [vmem:[%s1835_s11 + $0x48] sm:$0xff] }
  0x76   : > { %1110 = vmatprep.subr.bf16.mxu0 %v373_v7  ;;  %1198 = vmatprep.subr.bf16.mxu1 %v373_v7  ;;  %v371_v13 = vpack.c.bf16 %v361_v12, %v360_v11  ;;  %v358_v15 = vld [vmem:[%s1835_s11 + $0x40] sm:$0xff]  ;;  %v1390_v18 = vld [vmem:[%s1828_s25 + $0x28] sm:$0xff]   ;;  %v356_v19 = vld [vmem:[%s1835_s11 + $0x30] sm:$0xff] }
  0x77   : > { %423 = vxpose.xlu0.c.b16.cont [2/8] %v1386_v2, 128  ;;  %1111 = vmatpush3.bf16.msra.mxu0 %v373_v7  ;;  %v370_v17 = vpack.c.bf16 %v359_v16, %v358_v15  ;;  %v357_v20 = vld [vmem:[%s1835_s11 + $0x38] sm:$0xff]  ;;  %v1391_v22 = vld [vmem:[%s1828_s25 + $0x30] sm:$0xff]   ;;  %v354_v23 = vld [vmem:[%s1835_s11 + $0x20] sm:$0xff] }
  0x78   : > { %1206 = vmatpush3.bf16.msra.mxu1 %v373_v7  ;;  %1112 = vmatprep.subr.bf16.mxu0 %v372_v10  ;;  %v369_v21 = vpack.c.bf16 %v357_v20, %v356_v19  ;;  %v355_v24 = vld [vmem:[%s1835_s11 + $0x28] sm:$0xff]  ;;  %v1392_v26 = vld [vmem:[%s1828_s25 + $0x38] sm:$0xff]   ;;  %v352_v27 = vld [vmem:[%s1835_s11 + $0x10] sm:$0xff]  ;;  %p1053_p3 = scmp.ne.s32.totalorder %s2083_s6, 2 }
  0x79   : > { %1199 = vmatprep.subr.bf16.mxu1 %v372_v10  ;;  %v368_v25 = vpack.c.bf16 %v355_v24, %v354_v23  ;;  %v353_v28 = vld [vmem:[%s1835_s11 + $0x18] sm:$0xff]  ;;  %v350_v30 = vld [vmem:[%s1835_s11] sm:$0xff]  ;;  %v351_v31 = vld [vmem:[%s1835_s11 + $0x8] sm:$0xff]  ;;  %s2084_s7 = sld [smem:[#allocation19_spill]] (!%p1053_p3) }
  0x7a   : > { %v367_v29 = vpack.c.bf16 %v353_v28, %v352_v27  ;;  %v366_v32 = vpack.c.bf16 %v351_v31, %v350_v30  ;;  %v320_v41 = vld [vmem:[#allocation2 + $0x58] sm:$0xff]  ;;  %v318_v43 = vld [vmem:[#allocation2 + $0x30] sm:$0xff]  ;;  %v319_v49 = vld [vmem:[#allocation2] sm:$0xff] }
  0x7b   : > { %424 = vxpose.xlu0.c.b16.cont [3/8] %v1387_v3, 128  ;;  %1113 = vmatpush3.bf16.msra.mxu0 %v372_v10  ;;  %v321_v46 = vld [vmem:[#allocation2 + $0x18] sm:$0xff]  ;;  %v324_v52 = vld [vmem:[#allocation2 + $0x8] sm:$0xff]  ;;  %v322_v55 = vld [vmem:[#allocation2 + $0x50] sm:$0xff] }
  0x7c   : > { %1207 = vmatpush3.bf16.msra.mxu1 %v372_v10  ;;  %1114 = vmatprep.subr.bf16.mxu0 %v371_v13  ;;  %v325_v58 = vld [vmem:[#allocation2 + $0x48] sm:$0xff]  ;;  %v328_v0 = vld [vmem:[#allocation2 + $0x10] sm:$0xff]  ;;  %v326_v3 = vld [vmem:[#allocation2 + $0x40] sm:$0xff] }
  0x7d   : > { %1200 = vmatprep.subr.bf16.mxu1 %v371_v13  ;;  %v323_v61 = vld [vmem:[#allocation2 + $0x68] sm:$0xff]  ;;  %v329_v6 = vld [vmem:[#allocation2 + $0x38] sm:$0xff]  ;;  %v330_v15 = vld [vmem:[#allocation2 + $0x60] sm:$0xff] }
  0x7e   : > { %v332_v12 = vld [vmem:[#allocation2 + $0x78] sm:$0xff] }
  0x7f   : > { %425 = vxpose.xlu0.c.b16.cont [4/8] %v1388_v9, 128  ;;  %1115 = vmatpush3.bf16.msra.mxu0 %v371_v13  ;;  %v327_v9 = vld [vmem:[#allocation2 + $0x20] sm:$0xff] }
  0x80   : > { %1208 = vmatpush3.bf16.msra.mxu1 %v371_v13  ;;  %1116 = vmatprep.subr.bf16.mxu0 %v370_v17 }
  0x81   : > { %1201 = vmatprep.subr.bf16.mxu1 %v370_v17 }
  0x83   : > { %426 = vxpose.xlu0.c.b16.cont [5/8] %v1389_v14, 128  ;;  %1117 = vmatpush3.bf16.msra.mxu0 %v370_v17 }
  0x84   : > { %1209 = vmatpush3.bf16.msra.mxu1 %v370_v17  ;;  %1118 = vmatprep.subr.bf16.mxu0 %v369_v21 }
  0x85   : > { %1202 = vmatprep.subr.bf16.mxu1 %v369_v21 }
  0x87   : > { %427 = vxpose.xlu0.c.b16.cont [6/8] %v1390_v18, 128  ;;  %1119 = vmatpush3.bf16.msra.mxu0 %v369_v21  ;;  %v333_v18 = vld [vmem:[#allocation2 + $0x28] sm:$0xff] }
  0x88   : > { %1210 = vmatpush3.bf16.msra.mxu1 %v369_v21  ;;  %1120 = vmatprep.subr.bf16.mxu0 %v368_v25  ;;  %v331_v21 = vld [vmem:[#allocation2 + $0x70] sm:$0xff] }
  0x89   : > { %1203 = vmatprep.subr.bf16.mxu1 %v368_v25 }
  0x8b   : > { %428 = vxpose.xlu0.c.b16.cont [7/8] %v1391_v22, 128  ;;  %1121 = vmatpush3.bf16.msra.mxu0 %v368_v25 }
  0x8c   : > { %1211 = vmatpush3.bf16.msra.mxu1 %v368_v25  ;;  %1122 = vmatprep.subr.bf16.mxu0 %v367_v29 }
  0x8d   : > { %1204 = vmatprep.subr.bf16.mxu1 %v367_v29 }
  0x8f   : > { %429 = vxpose.xlu0.c.b16.end [8/8] %v1392_v26, 128  ;;  %1123 = vmatpush3.bf16.msra.mxu0 %v367_v29 }
  0x90   : > { %1212 = vmatpush3.bf16.msra.mxu1 %v367_v29  ;;  %1124 = vmatprep.subr.bf16.mxu0 %v366_v32 }
  0x91   : > { %1205 = vmatprep.subr.bf16.mxu1 %v366_v32 }
  0x93   : > { %1125 = vmatpush3.bf16.msra.mxu0 %v366_v32 }
  0x94   : > { %1213 = vmatpush3.bf16.msra.mxu1 %v366_v32 }
  0xd5   : > { %v430_v33 = vpop.trf.xlu0 }
  0xd6   : > { %1126 = vmatprep.mubr.bf16.mxu0 %v430_v33 }
  0xd9   : > { %v431_v34 = vpop.trf.xlu0 }
  0xda   : > { %1127 = vmatmul.mubr.bf16.vlgmr.msra.gmra.mxu0 %v431_v34 }
  0xdd   : > { %v432_v35 = vpop.trf.xlu0 }
  0xde   : > { %1130 = vmatprep.mubr.bf16.mxu0 %v432_v35 }
  0xe1   : > { %v433_v36 = vpop.trf.xlu0 }
  0xe2   : > { %1131 = vmatmul.mubr.bf16.gmra.mxu0 %v433_v36 }
  0xe5   : > { %v434_v37 = vpop.trf.xlu0 }
  0xe6   : > { %1134 = vmatprep.mubr.bf16.mxu1 %v434_v37 }
  0xe9   : > { %v435_v38 = vpop.trf.xlu0 }
  0xea   : > { %1135 = vmatmul.mubr.bf16.vlgmr.msra.gmra.mxu1 %v435_v38 }
  0xed   : > { %v436_v39 = vpop.trf.xlu0 }
  0xee   : > { %1138 = vmatprep.mubr.bf16.mxu1 %v436_v39 }
  0xf1   : > { %v437_v40 = vpop.trf.xlu0 }
  0xf2   : > { %1139 = vmatmul.mubr.bf16.gmra.mxu1 %v437_v40 }
 0x19a   : > { %v1128_v42 = vpop.f32.mrf.mxu0 }
 0x19b   : > { %v537_v44 = vadd.f32 %v1128_v42, %v320_v41 }
 0x19c   : > { %v472_v45 = vpop.f32.mrf.mxu0 }
 0x19d   : > { %553 = vst [vmem:[#allocation2 + $0x58] sm:$0xff] %v537_v44  ;;  %v535_v47 = vadd.f32 %v472_v45, %v318_v43 }
 0x19e   : > { %v1129_v48 = vpop.f32.mrf.mxu0 }
 0x19f   : > { %551 = vst [vmem:[#allocation2 + $0x30] sm:$0xff] %v535_v47  ;;  %v538_v50 = vadd.f32 %v1129_v48, %v321_v46 }
 0x1a0   : > { %v475_v51 = vpop.f32.mrf.mxu0 }
 0x1a1   : > { %554 = vst [vmem:[#allocation2 + $0x18] sm:$0xff] %v538_v50  ;;  %v536_v53 = vadd.f32 %v475_v51, %v319_v49 }
 0x1a2   : > { %v1132_v54 = vpop.f32.mrf.mxu0 }
 0x1a3   : > { %552 = vst [vmem:[#allocation2] sm:$0xff] %v536_v53  ;;  %v541_v56 = vadd.f32 %v1132_v54, %v324_v52 }
 0x1a4   : > { %v488_v57 = vpop.f32.mrf.mxu0 }
 0x1a5   : > { %557 = vst [vmem:[#allocation2 + $0x8] sm:$0xff] %v541_v56  ;;  %v539_v59 = vadd.f32 %v488_v57, %v322_v55 }
 0x1a6   : > { %v1133_v60 = vpop.f32.mrf.mxu0 }
 0x1a7   : > { %555 = vst [vmem:[#allocation2 + $0x50] sm:$0xff] %v539_v59  ;;  %v542_v62 = vadd.f32 %v1133_v60, %v325_v58 }
 0x1a8   : > { %v491_v63 = vpop.f32.mrf.mxu0 }
 0x1a9   : > { %558 = vst [vmem:[#allocation2 + $0x48] sm:$0xff] %v542_v62  ;;  %v540_v1 = vadd.f32 %v491_v63, %v323_v61 }
 0x1aa   : > { %v1136_v2 = vpop.f32.mrf.mxu1 }
 0x1ab   : > { %556 = vst [vmem:[#allocation2 + $0x68] sm:$0xff] %v540_v1  ;;  %v545_v4 = vadd.f32 %v1136_v2, %v328_v0 }
 0x1ac   : > { %v504_v5 = vpop.f32.mrf.mxu1 }
 0x1ad   : > { %561 = vst [vmem:[#allocation2 + $0x10] sm:$0xff] %v545_v4  ;;  %v543_v7 = vadd.f32 %v504_v5, %v326_v3 }
 0x1ae   : > { %v1137_v8 = vpop.f32.mrf.mxu1 }
 0x1af   : > { %559 = vst [vmem:[#allocation2 + $0x40] sm:$0xff] %v543_v7  ;;  %v546_v10 = vadd.f32 %v1137_v8, %v329_v6 }
 0x1b0   : > { %v507_v11 = vpop.f32.mrf.mxu1 }
 0x1b1   : > { %562 = vst [vmem:[#allocation2 + $0x38] sm:$0xff] %v546_v10  ;;  %v544_v13 = vadd.f32 %v507_v11, %v327_v9 }
 0x1b2   : > { %v1140_v14 = vpop.f32.mrf.mxu1 }
 0x1b3   : > { %560 = vst [vmem:[#allocation2 + $0x20] sm:$0xff] %v544_v13  ;;  %v549_v16 = vadd.f32 %v1140_v14, %v332_v12 }
 0x1b4   : > { %v520_v17 = vpop.f32.mrf.mxu1 }
 0x1b5   : > { %565 = vst [vmem:[#allocation2 + $0x78] sm:$0xff] %v549_v16  ;;  %v547_v19 = vadd.f32 %v520_v17, %v330_v15 }
 0x1b6   : > { %v1141_v20 = vpop.f32.mrf.mxu1 }
 0x1b7   : > { %563 = vst [vmem:[#allocation2 + $0x60] sm:$0xff] %v547_v19  ;;  %v550_v22 = vadd.f32 %v1141_v20, %v333_v18  ;;  %570 = sbr.rel (%p1053_p3) target bundleno = 690 (0x2b2), region = 52 }
 0x1b8   : > { %v523_v23 = vpop.f32.mrf.mxu1 }
 0x1b9   : > { %566 = vst [vmem:[#allocation2 + $0x28] sm:$0xff] %v550_v22  ;;  %v548_v24 = vadd.f32 %v523_v23, %v331_v21 }
 0x1bb   : > { %564 = vst [vmem:[#allocation2 + $0x70] sm:$0xff] %v548_v24 }
 0x1bc   : > { %v602_v25 = vld [vmem:[%s2084_s7 + $0x78] sm:$0xff]  ;;  %v601_v26 = vld [vmem:[%s2084_s7 + $0x70] sm:$0xff]  ;;  %v600_v27 = vld [vmem:[%s2084_s7 + $0x68] sm:$0xff]  ;;  %v1608_v53 = vmov 0  }
 0x1bd   : > { %1142 = vmatprep.subr.mxu0 %v602_v25  ;;  %1214 = vmatprep.subr.mxu1 %v602_v25  ;;  %v599_v28 = vld [vmem:[%s2084_s7 + $0x60] sm:$0xff]  ;;  %v598_v29 = vld [vmem:[%s2084_s7 + $0x58] sm:$0xff]  ;;  %v597_v30 = vld [vmem:[%s2084_s7 + $0x50] sm:$0xff] }
 0x1be   : > { %1143 = vmatpush3.msra.mxu0 %v602_v25  ;;  %1230 = vmatpush3.msra.mxu1 %v602_v25  ;;  %v596_v31 = vld [vmem:[%s2084_s7 + $0x48] sm:$0xff]  ;;  %v595_v32 = vld [vmem:[%s2084_s7 + $0x40] sm:$0xff]  ;;  %v594_v33 = vld [vmem:[%s2084_s7 + $0x38] sm:$0xff] }
 0x1bf   : > { %1144 = vmatprep.subr.mxu0 %v601_v26  ;;  %1215 = vmatprep.subr.mxu1 %v601_v26  ;;  %v593_v34 = vld [vmem:[%s2084_s7 + $0x30] sm:$0xff]  ;;  %v592_v35 = vld [vmem:[%s2084_s7 + $0x28] sm:$0xff]  ;;  %v591_v36 = vld [vmem:[%s2084_s7 + $0x20] sm:$0xff] }
 0x1c0   : > { %1145 = vmatpush3.msra.mxu0 %v601_v26  ;;  %1231 = vmatpush3.msra.mxu1 %v601_v26  ;;  %v590_v37 = vld [vmem:[%s2084_s7 + $0x18] sm:$0xff]  ;;  %v589_v38 = vld [vmem:[%s2084_s7 + $0x10] sm:$0xff]  ;;  %v588_v39 = vld [vmem:[%s2084_s7 + $0x8] sm:$0xff] }
 0x1c1   : > { %1146 = vmatprep.subr.mxu0 %v600_v27  ;;  %1216 = vmatprep.subr.mxu1 %v600_v27  ;;  %v587_v40 = vld [vmem:[%s2084_s7] sm:$0xff]  ;;  %v571_v41 = vld [vmem:[#allocation2 + $0x30] sm:$0xff]  ;;  %v573_v45 = vld [vmem:[#allocation2 + $0x58] sm:$0xff] }
 0x1c2   : > { %1147 = vmatpush3.msra.mxu0 %v600_v27  ;;  %1232 = vmatpush3.msra.mxu1 %v600_v27  ;;  %v579_v42 = vld [vmem:[#allocation2 + $0x40] sm:$0xff]  ;;  %v581_v46 = vld [vmem:[#allocation2 + $0x10] sm:$0xff]  ;;  %v574_v49 = vld [vmem:[#allocation2 + $0x18] sm:$0xff] }
 0x1c3   : > { %1148 = vmatprep.subr.mxu0 %v599_v28  ;;  %1217 = vmatprep.subr.mxu1 %v599_v28  ;;  %v572_v43 = vld [vmem:[#allocation2] sm:$0xff]  ;;  %v750_v47 = vld [vmem:[%s1848_s8 + $0x10] sm:$0xff]  ;;  %v582_v50 = vld [vmem:[#allocation2 + $0x38] sm:$0xff] }
 0x1c4   : > { %1149 = vmatpush3.msra.mxu0 %v599_v28  ;;  %1233 = vmatpush3.msra.mxu1 %v599_v28  ;;  %v580_v44 = vld [vmem:[#allocation2 + $0x20] sm:$0xff]  ;;  %v575_v51 = vld [vmem:[#allocation2 + $0x50] sm:$0xff]  ;;  %v751_v54 = vld [vmem:[%s1848_s8 + $0x18] sm:$0xff] }
 0x1c5   : > { %1150 = vmatprep.subr.mxu0 %v598_v29  ;;  %1218 = vmatprep.subr.mxu1 %v598_v29  ;;  %v748_v48 = vld [vmem:[%s1848_s8] sm:$0xff]  ;;  %v749_v55 = vld [vmem:[%s1848_s8 + $0x8] sm:$0xff]  ;;  %v584_v57 = vld [vmem:[#allocation2 + $0x70] sm:$0xff] }
 0x1c6   : > { %1151 = vmatpush3.msra.mxu0 %v598_v29  ;;  %1234 = vmatpush3.msra.mxu1 %v598_v29  ;;  %v583_v52 = vld [vmem:[#allocation2 + $0x60] sm:$0xff]  ;;  %v576_v56 = vld [vmem:[#allocation2 + $0x68] sm:$0xff]  ;;  %v585_v59 = vld [vmem:[#allocation2 + $0x78] sm:$0xff] }
 0x1c7   : > { %1152 = vmatprep.subr.mxu0 %v597_v30  ;;  %1219 = vmatprep.subr.mxu1 %v597_v30  ;;  %v577_v58 = vld [vmem:[#allocation2 + $0x8] sm:$0xff]  ;;  %v752_v61 = vld [vmem:[%s1848_s8 + $0x20] sm:$0xff]  ;;  %v755_v0 = vld [vmem:[%s1848_s8 + $0x38] sm:$0xff] }
 0x1c8   : > { %1153 = vmatpush3.msra.mxu0 %v597_v30  ;;  %1235 = vmatpush3.msra.mxu1 %v597_v30  ;;  %v753_v60 = vld [vmem:[%s1848_s8 + $0x28] sm:$0xff]  ;;  %v754_v1 = vld [vmem:[%s1848_s8 + $0x30] sm:$0xff]  ;;  %v756_v3 = vld [vmem:[%s1848_s8 + $0x40] sm:$0xff] }
 0x1c9   : > { %1154 = vmatprep.subr.mxu0 %v596_v31  ;;  %1220 = vmatprep.subr.mxu1 %v596_v31  ;;  %v578_v62 = vld [vmem:[#allocation2 + $0x48] sm:$0xff]  ;;  %v759_v4 = vld [vmem:[%s1848_s8 + $0x58] sm:$0xff]  ;;  %v758_v5 = vld [vmem:[%s1848_s8 + $0x50] sm:$0xff] }
 0x1ca   : > { %1155 = vmatpush3.msra.mxu0 %v596_v31  ;;  %1236 = vmatpush3.msra.mxu1 %v596_v31  ;;  %v586_v63 = vld [vmem:[#allocation2 + $0x28] sm:$0xff]  ;;  %v760_v7 = vld [vmem:[%s1848_s8 + $0x60] sm:$0xff]  ;;  %v763_v8 = vld [vmem:[%s1848_s8 + $0x78] sm:$0xff] }
 0x1cb   : > { %1156 = vmatprep.subr.mxu0 %v595_v32  ;;  %1221 = vmatprep.subr.mxu1 %v595_v32  ;;  %v757_v2 = vld [vmem:[%s1848_s8 + $0x48] sm:$0xff]  ;;  %v762_v9 = vld [vmem:[%s1848_s8 + $0x70] sm:$0xff] }
 0x1cc   : > { %1157 = vmatpush3.msra.mxu0 %v595_v32  ;;  %1237 = vmatpush3.msra.mxu1 %v595_v32  ;;  %v761_v6 = vld [vmem:[%s1848_s8 + $0x68] sm:$0xff] }
 0x1cd   : > { %1158 = vmatprep.subr.mxu0 %v594_v33  ;;  %1222 = vmatprep.subr.mxu1 %v594_v33 }
 0x1ce   : > { %1159 = vmatpush3.msra.mxu0 %v594_v33  ;;  %1238 = vmatpush3.msra.mxu1 %v594_v33 }
 0x1cf   : > { %1160 = vmatprep.subr.mxu0 %v593_v34  ;;  %1223 = vmatprep.subr.mxu1 %v593_v34 }
 0x1d0   : > { %1161 = vmatpush3.msra.mxu0 %v593_v34  ;;  %1239 = vmatpush3.msra.mxu1 %v593_v34 }
 0x1d1   : > { %1162 = vmatprep.subr.mxu0 %v592_v35  ;;  %1224 = vmatprep.subr.mxu1 %v592_v35 }
 0x1d2   : > { %1163 = vmatpush3.msra.mxu0 %v592_v35  ;;  %1240 = vmatpush3.msra.mxu1 %v592_v35 }
 0x1d3   : > { %1164 = vmatprep.subr.mxu0 %v591_v36  ;;  %1225 = vmatprep.subr.mxu1 %v591_v36 }
 0x1d4   : > { %1165 = vmatpush3.msra.mxu0 %v591_v36  ;;  %1241 = vmatpush3.msra.mxu1 %v591_v36 }
 0x1d5   : > { %1166 = vmatprep.subr.mxu0 %v590_v37  ;;  %1226 = vmatprep.subr.mxu1 %v590_v37 }
 0x1d6   : > { %1167 = vmatpush3.msra.mxu0 %v590_v37  ;;  %1242 = vmatpush3.msra.mxu1 %v590_v37 }
 0x1d7   : > { %1168 = vmatprep.subr.mxu0 %v589_v38  ;;  %1227 = vmatprep.subr.mxu1 %v589_v38 }
 0x1d8   : > { %1169 = vmatpush3.msra.mxu0 %v589_v38  ;;  %1243 = vmatpush3.msra.mxu1 %v589_v38 }
 0x1d9   : > { %1170 = vmatprep.subr.mxu0 %v588_v39  ;;  %1228 = vmatprep.subr.mxu1 %v588_v39 }
 0x1da   : > { %1171 = vmatpush3.msra.mxu0 %v588_v39  ;;  %1244 = vmatpush3.msra.mxu1 %v588_v39 }
 0x1db   : > { %1172 = vmatprep.subr.mxu0 %v587_v40  ;;  %1229 = vmatprep.subr.mxu1 %v587_v40 }
 0x1dc   : > { %1173 = vmatpush3.msra.mxu0 %v587_v40  ;;  %1245 = vmatpush3.msra.mxu1 %v587_v40 }
 0x1dd   : > { %1174 = vmatprep.mubr.f32.mxu0 %v571_v41  ;;  %1186 = vmatprep.mubr.f32.mxu1 %v579_v42 }
 0x1de   : > { %1175 = vmatmul.mubr.f32.vlgmr.msra.gmra.mxu0 %v572_v43  ;;  %1187 = vmatmul.mubr.f32.vlgmr.msra.gmra.mxu1 %v580_v44 }
 0x1df   : > { %1177 = vmatprep.mubr.f32.mxu0 %v573_v45  ;;  %1189 = vmatprep.mubr.f32.mxu1 %v581_v46 }
 0x1e0   : > { %1394 = vset.pattern.permute.xlu1 %v1608_v53  ;;  %1393 = vset.pattern.permute.xlu0 %v1608_v53 }
 0x1e1   : > { %776 = vperm.xlu1 %1394, %v750_v47   ;;  %766 = vperm.xlu0 %1393, %v748_v48  }
 0x1e2   : > { %1178 = vmatmul.mubr.f32.gmra.mxu0 %v574_v49  ;;  %1190 = vmatmul.mubr.f32.gmra.mxu1 %v582_v50 }
 0x1e3   : > { %1180 = vmatprep.mubr.f32.mxu0 %v575_v51  ;;  %1192 = vmatprep.mubr.f32.mxu1 %v583_v52 }
 0x1e5   : > { %781 = vperm.xlu1 %1394, %v751_v54   ;;  %771 = vperm.xlu0 %1393, %v749_v55  }
 0x1e6   : > { %1181 = vmatmul.mubr.f32.gmra.mxu0 %v576_v56  ;;  %1193 = vmatmul.mubr.f32.gmra.mxu1 %v584_v57 }
 0x1e7   : > { %1183 = vmatprep.mubr.f32.mxu0 %v577_v58  ;;  %1195 = vmatprep.mubr.f32.mxu1 %v585_v59 }
 0x1e9   : > { %791 = vperm.xlu1 %1394, %v753_v60   ;;  %786 = vperm.xlu0 %1393, %v752_v61  }
 0x1ea   : > { %1184 = vmatmul.mubr.f32.gmra.mxu0 %v578_v62  ;;  %1196 = vmatmul.mubr.f32.gmra.mxu1 %v586_v63 }
 0x1ed   : > { %801 = vperm.xlu1 %1394, %v755_v0   ;;  %796 = vperm.xlu0 %1393, %v754_v1  }
 0x1f1   : > { %811 = vperm.xlu1 %1394, %v757_v2   ;;  %806 = vperm.xlu0 %1393, %v756_v3  }
 0x1f5   : > { %821 = vperm.xlu1 %1394, %v759_v4   ;;  %816 = vperm.xlu0 %1393, %v758_v5  }
 0x1f9   : > { %831 = vperm.xlu1 %1394, %v761_v6   ;;  %826 = vperm.xlu0 %1393, %v760_v7  }
 0x1fd   : > { %841 = vperm.xlu1 %1394, %v763_v8   ;;  %836 = vperm.xlu0 %1393, %v762_v9  }
 0x25c   : > { %v777_v10 = vpop.permute.xlu1 %776  ;;  %v767_v11 = vpop.permute.xlu0 %766 }
 0x260   : > { %v782_v12 = vpop.permute.xlu1 %781  ;;  %v772_v13 = vpop.permute.xlu0 %771 }
 0x264   : > { %v792_v14 = vpop.permute.xlu1 %791  ;;  %v787_v15 = vpop.permute.xlu0 %786 }
 0x268   : > { %v802_v16 = vpop.permute.xlu1 %801  ;;  %v1942_v17 = vpop.permute.xlu0 %796 }
 0x26c   : > { %v812_v18 = vpop.permute.xlu1 %811  ;;  %v807_v19 = vpop.permute.xlu0 %806 }
 0x270   : > { %v822_v20 = vpop.permute.xlu1 %821  ;;  %v817_v23 = vpop.permute.xlu0 %816 }
 0x274   : > { %v832_v34 = vpop.permute.xlu1 %831  ;;  %v827_v41 = vpop.permute.xlu0 %826 }
 0x278   : > { %v842_v54 = vpop.permute.xlu1 %841  ;;  %v837_v61 = vpop.permute.xlu0 %836 }
 0x29e   : > { %v1176_v21 = vpop.f32.mrf.mxu0  ;;  %v1188_v22 = vpop.f32.mrf.mxu1 }
 0x29f   : > { %v845_v24 = vmul.f32 %v1176_v21, %v772_v13  ;;  %v853_v25 = vmul.f32 %v1188_v22, %v812_v18 }
 0x2a0   : > { %v669_v26 = vpop.f32.mrf.mxu0  ;;  %v709_v27 = vpop.f32.mrf.mxu1 }
 0x2a1   : > { %v861_v28 = vmax.f32 %v845_v24, 0.0  ;;  %v869_v29 = vmax.f32 %v853_v25, 0.0  ;;  %v844_v30 = vmul.f32 %v767_v11, %v669_v26  ;;  %v852_v31 = vmul.f32 %v807_v19, %v709_v27 }
 0x2a2   : > { %v1179_v32 = vpop.f32.mrf.mxu0  ;;  %v1191_v33 = vpop.f32.mrf.mxu1 }
 0x2a3   : > { %877 = vst [vmem:[%s1850_s30 + $0x8] sm:$0xff] %v861_v28  ;;  %885 = vst [vmem:[%s1850_s30 + $0x48] sm:$0xff] %v869_v29  ;;  %v860_v35 = vmax.f32 %v844_v30, 0.0  ;;  %v868_v36 = vmax.f32 %v852_v31, 0.0  ;;  %v847_v37 = vmul.f32 %v1179_v32, %v782_v12  ;;  %v855_v38 = vmul.f32 %v1191_v33, %v822_v20 }
 0x2a4   : > { %v679_v39 = vpop.f32.mrf.mxu0  ;;  %v719_v40 = vpop.f32.mrf.mxu1 }
 0x2a5   : > { %876 = vst [vmem:[%s1850_s30] sm:$0xff] %v860_v35  ;;  %884 = vst [vmem:[%s1850_s30 + $0x40] sm:$0xff] %v868_v36  ;;  %v863_v42 = vmax.f32 %v847_v37, 0.0  ;;  %v871_v43 = vmax.f32 %v855_v38, 0.0  ;;  %v846_v44 = vmul.f32 %v777_v10, %v679_v39  ;;  %v854_v45 = vmul.f32 %v817_v23, %v719_v40 }
 0x2a6   : > { %v1182_v46 = vpop.f32.mrf.mxu0  ;;  %v1194_v47 = vpop.f32.mrf.mxu1 }
 0x2a7   : > { %879 = vst [vmem:[%s1850_s30 + $0x18] sm:$0xff] %v863_v42  ;;  %887 = vst [vmem:[%s1850_s30 + $0x58] sm:$0xff] %v871_v43  ;;  %v862_v48 = vmax.f32 %v846_v44, 0.0  ;;  %v870_v49 = vmax.f32 %v854_v45, 0.0  ;;  %v849_v50 = vmul.f32 %v1182_v46, %v792_v14  ;;  %v857_v51 = vmul.f32 %v1194_v47, %v832_v34 }
 0x2a8   : > { %v689_v52 = vpop.f32.mrf.mxu0  ;;  %v729_v53 = vpop.f32.mrf.mxu1 }
 0x2a9   : > { %878 = vst [vmem:[%s1850_s30 + $0x10] sm:$0xff] %v862_v48  ;;  %886 = vst [vmem:[%s1850_s30 + $0x50] sm:$0xff] %v870_v49  ;;  %v865_v55 = vmax.f32 %v849_v50, 0.0  ;;  %v873_v56 = vmax.f32 %v857_v51, 0.0  ;;  %v848_v57 = vmul.f32 %v787_v15, %v689_v52  ;;  %v856_v58 = vmul.f32 %v827_v41, %v729_v53 }
 0x2aa   : > { %v1185_v59 = vpop.f32.mrf.mxu0  ;;  %v1197_v60 = vpop.f32.mrf.mxu1 }
 0x2ab   : > { %881 = vst [vmem:[%s1850_s30 + $0x28] sm:$0xff] %v865_v55  ;;  %889 = vst [vmem:[%s1850_s30 + $0x68] sm:$0xff] %v873_v56  ;;  %v864_v62 = vmax.f32 %v848_v57, 0.0  ;;  %v872_v63 = vmax.f32 %v856_v58, 0.0  ;;  %v851_v0 = vmul.f32 %v1185_v59, %v802_v16  ;;  %v859_v1 = vmul.f32 %v1197_v60, %v842_v54 }
 0x2ac   : > { %v699_v2 = vpop.f32.mrf.mxu0  ;;  %v739_v3 = vpop.f32.mrf.mxu1 }
 0x2ad   : > { %880 = vst [vmem:[%s1850_s30 + $0x20] sm:$0xff] %v864_v62  ;;  %888 = vst [vmem:[%s1850_s30 + $0x60] sm:$0xff] %v872_v63  ;;  %v867_v4 = vmax.f32 %v851_v0, 0.0  ;;  %v875_v5 = vmax.f32 %v859_v1, 0.0  ;;  %v850_v6 = vmul.f32 %v1942_v17, %v699_v2  ;;  %v858_v7 = vmul.f32 %v837_v61, %v739_v3 }
 0x2af   : > { %883 = vst [vmem:[%s1850_s30 + $0x38] sm:$0xff] %v867_v4  ;;  %891 = vst [vmem:[%s1850_s30 + $0x78] sm:$0xff] %v875_v5  ;;  %v866_v8 = vmax.f32 %v850_v6, 0.0  ;;  %v874_v9 = vmax.f32 %v858_v7, 0.0 }
 0x2b1   : > { %882 = vst [vmem:[%s1850_s30 + $0x30] sm:$0xff] %v866_v8  ;;  %890 = vst [vmem:[%s1850_s30 + $0x70] sm:$0xff] %v874_v9 }
 0x2b2 PF: > { %s2085_s8 = sld [smem:[#allocation14_spill]]  ;;  %s906_s3 = sshll.u32 %s1850_s30, 4  ;;  %s1968_s3 = int_to_ptr.vmem [resolvable:$true] %s906_s3 }
 0x2b3   : > { %s2086_s2 = sld [smem:[#allocation21_spill]]  ;;  %s1972_s6 = scalar_lea.sflag [#allocation5], %s285_s5 }
 0x2b4   : > { %s1451_s25 = scalar_lea.vmem %s1968_s3, 2048  ;;  %s1609_s0 = smov [#allocation8]  }
 0x2b5   : > { %p1452_p11 = scmp.ne.s32.totalorder %s1968_s3, %s1451_s25  ;;  %s1455_s1 = sshll.u32 %s1609_s0, 4  ;;  %s1456_s1 = int_to_ptr.vmem [resolvable:$false] %s1455_s1 }
 0x2b6   : > { %s1457_s11 = scalar_lea.vmem %s1456_s1, 4096  ;;  %p1458_p4 = scmp.lt.s32.totalorder %s1968_s3, %s1456_s1 }
 0x2b7   : > { %p1453_p9 = pnand %p1452_p11, %p1798_p8  ;;  %p1459_p7 = scmp.lt.s32.totalorder %s1457_s11, %s1451_s25 }
 0x2b8   : > { %s1061_s10 = sshll.u32 %s2085_s8, 11 }
 0x2b9   : > { %s1965_s29 = scalar_lea.hbm %s2086_s2, %s1061_s10  ;;  %p1454_p1 = pneg %p1453_p9 }
 0x2ba   : > { %p1460_p5 = por %p1459_p7, %p1458_p4 }
 0x2bc   : > { %p1461_p6 = pnand %p1460_p5, %p1454_p1 }
 0x2be   : > { %1464 = shalt.err (!%p1461_p6)
}
 0x2bf   : > { %s1465_s5 = scalar_lea.hbm %s1965_s29, 2048  ;;  %s1469_s12 = scalar_lea.hbm %s2086_s2, 4096 }
 0x2c0   : > { %p1466_p0 = scmp.ne.s32.totalorder %s1965_s29, %s1465_s5  ;;  %p1470_p13 = scmp.lt.s32.totalorder %s1965_s29, %s2086_s2 }
 0x2c1   : > { %p1471_p3 = scmp.lt.s32.totalorder %s1469_s12, %s1465_s5 }
 0x2c2   : > { %p1467_p12 = pnand %p1466_p0, %p1798_p8 }
 0x2c3   : > { %p1472_p11 = por %p1471_p3, %p1470_p13 }
 0x2c4   : > { %p1468_p10 = pneg %p1467_p12 }
 0x2c6   : > { %p1473_p9 = pnand %p1472_p11, %p1468_p10 }
 0x2c8   : > { %1476 = shalt.err (!%p1473_p9)
}
 0x2c9   : > { %s1610_s18 = smov 128   ;;  %s1611_s24 = smov 8  }
 0x2ca   : > { %1250 = dma.vmem_to_hbm [thread:$0]  (%p1798_p8), %s1968_s3, 2048, %s1965_s29, %s1972_s6, %s1610_s18, %s1610_s18, %s1611_s24  }
 0x2cb PF: > { %s2087_s25 = sld [smem:[#allocation12_spill]]  ;;  %p1264_p1 = scmp.ge.s32.totalorder %s1599_s28, 2 }
 0x2cd   : > { %p1260_p4 = pnand %p1264_p1, %p1804_p2 }
 0x2cf   : > { %p1261_p7 = pneg %p1260_p4 }
 0x2d1   : > { %s921_s0 = sand.u32 1, %s2087_s25  }
 0x2d2   : > { %s922_s1 = scalar_lea.sflag [#allocation5], %s921_s0 }
 0x2d3   : > { %1542 = dma.done.wait (%p1261_p7), %s922_s1, 2048  }
 0x2d4   : > { %1544 = vsyncadd (%p1261_p7), %s922_s1, 4294965248  ;;  %s23_s28 = sadd.s32 1, %s1599_s28   ;;  %s2089_s21 = smov %s1780_s15 }
 0x2d5   : > { %p2000_p5 = scmp.ge.s32.totalorder %s23_s28, 8   ;;  %s2090_s4 = sld [smem:[#allocation15_spill]] }
 0x2d6   : > { %s2091_s29 = sld [smem:[#allocation16_spill]]  ;;  %s2092_s15 = smov %s1551_s16 }
 0x2d7   : > { %s2093_s16 = smov %s1555_s17  ;;  %s2094_s17 = smov %s1737_s13 }
 0x2d8   : > { %s2095_s18 = smov %s1563_s19  ;;  %s2096_s19 = smov %s1567_s20 }
 0x2d9   : > { %s2097_s20 = smov %s2089_s21  ;;  %s2098_s21 = smov %s1575_s22 }
 0x2da   : > { %s2099_s22 = smov %s1579_s23  ;;  %s2100_s23 = smov %s1740_s14 }
 0x2db   : > { %s2101_s24 = smov %s1591_s26  ;;  %s2102_s25 = smov %s1595_s27 }
 0x2dc   : > { %s2103_s26 = smov %s2090_s4  ;;  %s2104_s27 = smov %s2091_s29 }
 0x2dd   :  { %22 = sbr.rel (!%p2000_p5) target bundleno = 18 (0x12), region = 105 }
 0x2e2   :  { %927 = vsyncpa [#allocation4], 1 }
 0x2e3   :  { %929 = vsyncpa [#allocation4 + $0x1], 1 }
 0x2e4   :  { %930 = vsyncpa [#allocation7], 1 }
 0x2e5   :  { %932 = vsyncpa [#allocation7 + $0x1], 1 }
 0x2e6   :  { %933 = vsyncpa [#allocation5], 1 }
 0x2e7   :  { %935 = vsyncpa [#allocation5 + $0x1], 1 }

</bundles_post_ra>
